<compile_context>
chip_gen: v7x
topology: tpu7x:2x2x1
jax: 0.10.0
libtpu: 0.0.40
codegen_flags: <defaults>
</compile_context>

<pallas_src>
import functools

import jax
import jax.numpy as jnp
from jax.experimental import pallas as pl
from jax.experimental.pallas import tpu as pltpu

LANES = 128
ACC_ROWS = 64  # accumulator height: 8 f32 vregs


def _chip_config():
    """Return (default_tile_rows, vmem_limit_bytes) sized for HBM streaming."""
    try:
        vmem = pltpu.get_tpu_info().vmem_capacity_bytes
    except Exception:
        vmem = 128 << 20
    if vmem <= (64 << 20):
        # v7x-class (64 MiB physical VMEM, fastest HBM): 16384-row blocks are
        # 8 MiB/input; 2 inputs x 2 pipeline buffers = 32 MiB, and a 48 MiB
        # scoped limit leaves headroom for scratch/temporaries.
        return 16384, 48 << 20
    # v5e / v6e class (128 MiB physical VMEM): same big blocks, 64 MiB limit.
    return 16384, 64 << 20


def _pick_tiling(rows, tile_hint):
    """Return (tile_rows, acc_rows) with tile_rows % acc_rows == 0."""
    tile_hint = max(ACC_ROWS, (int(tile_hint) // ACC_ROWS) * ACC_ROWS)
    if rows <= 2 * ACC_ROWS:
        # Tiny input: a single full-extent block (always a legal block shape),
        # no inner chunking.
        return rows, rows
    tile = min(tile_hint, (rows // ACC_ROWS) * ACC_ROWS)
    return tile, ACC_ROWS


def _mse_kernel(x_ref, y_ref, o_ref, acc_ref, *, rows, tile_rows, acc_rows,
                inner_steps, total_blocks, edge_possible):
    """Accumulate sum((x-y)^2) per core; write one scalar partial per core."""
    c = pl.program_id(0)          # parallel (core) axis
    i = pl.program_id(1)          # streaming / reduction axis
    b = c * inner_steps + i       # global (unclamped) block id

    @pl.when(i == 0)
    def _init():
        acc_ref[...] = jnp.zeros_like(acc_ref)

    num_chunks = tile_rows // acc_rows

    def accumulate(masked):
        def chunk(r0, acc):
            xc = x_ref[pl.ds(r0, acc_rows), :].astype(jnp.float32)
            yc = y_ref[pl.ds(r0, acc_rows), :].astype(jnp.float32)
            d = xc - yc
            if masked:
                # Mask rows past the end of the real array (ragged last block
                # and clamped overhang blocks contribute exactly zero).
                row = (jax.lax.broadcasted_iota(jnp.int32, (acc_rows, LANES), 0)
                       + (b * tile_rows + r0))
                d = jnp.where(row < rows, d, jnp.float32(0.0))
            return acc + d * d

        zero = jnp.zeros((acc_rows, LANES), jnp.float32)
        if num_chunks == 1:
            partial = chunk(0, zero)
        else:
            def body(k, acc):
                r0 = pl.multiple_of(k * acc_rows, acc_rows)
                return chunk(r0, acc)
            partial = jax.lax.fori_loop(
                0, num_chunks, body, zero,
                unroll=True if num_chunks <= 8 else 4)
        acc_ref[...] += partial

    if edge_possible:
        @pl.when(b < total_blocks - 1)
        def _steady():
            accumulate(masked=False)

        @pl.when(b >= total_blocks - 1)
        def _edge():
            accumulate(masked=True)
    else:
        accumulate(masked=False)

    @pl.when(i == inner_steps - 1)
    def _finalize():
        # Single cross-lane reduction + scalar store, once per core.
        o_ref[0, 0] = jnp.sum(acc_ref[...])


def mse_loss(x, y, *, tile_rows=None):
    """Pallas equivalent of torch.mean((x - y) ** 2). Returns float32 scalar."""
    assert x.shape == y.shape, "mse_loss expects matching shapes (no broadcasting)"
    n = x.size
    if n == 0:
        return jnp.float32(jnp.nan)

    xf = jnp.ravel(x)
    yf = jnp.ravel(y)
    rows = n // LANES
    n_main = rows * LANES
    rem = n - n_main

    # <128-element lane remainder: reduce with plain jnp (tiny slice) instead
    # of padding/copying the whole array.
    if rem:
        xt = xf[n_main:].astype(jnp.float32)
        yt = yf[n_main:].astype(jnp.float32)
        tail_sum = jnp.sum((xt - yt) * (xt - yt))
    else:
        tail_sum = jnp.float32(0.0)

    if rows == 0:
        return (tail_sum / n).astype(jnp.float32)

    # TODO(synk): when rem != 0 this prefix slice still costs one fused XLA
    # copy of the prefix; a flat 1-D BlockSpec with in-kernel element masking
    # would remove it. The aligned case (rem == 0) is a free reshape.
    x2 = (xf[:n_main] if rem else xf).reshape(rows, LANES)
    y2 = (yf[:n_main] if rem else yf).reshape(rows, LANES)

    default_tile, vmem_limit = _chip_config()
    tile, acc_rows = _pick_tiling(rows, tile_rows if tile_rows else default_tile)

    total_blocks = pl.cdiv(rows, tile)
    # 2-way core split: real parallelism on v7x (2 TCs/chip), harmless serial
    # iteration on single-TC chips.
    num_cores = 2 if total_blocks >= 2 else 1
    inner_steps = pl.cdiv(total_blocks, num_cores)
    clamp_needed = num_cores * inner_steps > total_blocks
    edge_possible = clamp_needed or (rows % tile != 0)

    if clamp_needed:
        def in_map(c, i):
            return (jnp.minimum(c * inner_steps + i, total_blocks - 1), 0)
    else:
        def in_map(c, i):
            return (c * inner_steps + i, 0)

    kernel = functools.partial(
        _mse_kernel,
        rows=rows, tile_rows=tile, acc_rows=acc_rows,
        inner_steps=inner_steps, total_blocks=total_blocks,
        edge_possible=edge_possible)

    partials = pl.pallas_call(
        kernel,
        out_shape=jax.ShapeDtypeStruct((num_cores, 1), jnp.float32),
        grid_spec=pltpu.PrefetchScalarGridSpec(
            num_scalar_prefetch=0,
            grid=(num_cores, inner_steps),
            in_specs=[
                pl.BlockSpec((tile, LANES), in_map),
                pl.BlockSpec((tile, LANES), in_map),
            ],
            out_specs=pl.BlockSpec((1, 1), lambda c, i: (c, 0),
                                   memory_space=pltpu.SMEM),
            scratch_shapes=[pltpu.VMEM((acc_rows, LANES), jnp.float32)],
        ),
        compiler_params=pltpu.CompilerParams(
            dimension_semantics=("parallel", "arbitrary"),
            vmem_limit_bytes=vmem_limit,
        ),
    )(x2, y2)

    return ((jnp.sum(partials) + tail_sum) / n).astype(jnp.float32)


if __name__ == "__main__":
    key = jax.random.PRNGKey(0)
    kx, ky = jax.random.split(key)

    # Primary shape implied by the module's forward (small NCHW batch).
    shape = (2, 4, 16, 16)
    x = jax.random.normal(kx, shape, dtype=jnp.float32)
    y = jax.random.normal(ky, shape, dtype=jnp.float32)
    loss = mse_loss(x, y)
    jax.block_until_ready(loss)
    ref = jnp.mean((x - y) ** 2)
    assert jnp.allclose(loss, ref, rtol=1e-5, atol=1e-6), (loss, ref)

    # Exercise the multi-block / 2-core / ragged-edge path with a small tile.
    shape2 = (5, 13, 32, 32)            # 66560 elems -> 520 lane-rows
    x2 = jax.random.normal(kx, shape2, dtype=jnp.float32)
    y2 = jax.random.normal(ky, shape2, dtype=jnp.float32)
    loss2 = mse_loss(x2, y2, tile_rows=128)
    jax.block_until_ready(loss2)
    ref2 = jnp.mean((x2 - y2) ** 2)
    assert jnp.allclose(loss2, ref2, rtol=1e-5, atol=1e-6), (loss2, ref2)

    # Lane-unaligned shape: tail handled with plain jnp.
    shape3 = (3, 67)
    x3 = jax.random.normal(kx, shape3, dtype=jnp.float32)
    y3 = jax.random.normal(ky, shape3, dtype=jnp.float32)
    loss3 = mse_loss(x3, y3)
    jax.block_until_ready(loss3)
    ref3 = jnp.mean((x3 - y3) ** 2)
    assert jnp.allclose(loss3, ref3, rtol=1e-5, atol=1e-6), (loss3, ref3)

    print("KERNEL_OK")
</pallas_src>

<mosaic_0001>
module attributes {stable_mosaic.version = 11 : i64} {
  func.func @_mse_kernel(%arg0: i32, %arg1: i32, %arg2: memref<16x128xf32, #tpu.memory_space<vmem>>, %arg3: memref<16x128xf32, #tpu.memory_space<vmem>>, %arg4: memref<1x1xf32, #tpu.memory_space<smem>>, %arg5: memref<16x128xf32, #tpu.memory_space<vmem>>) attributes {dimension_semantics = [#tpu.dimension_semantics<parallel>, #tpu.dimension_semantics<arbitrary>], iteration_bounds = array<i64: 1, 1>, scalar_prefetch = 0 : i64, scratch_operands = 1 : i64, tpu.core_type = #tpu.core_type<tc>, window_params = [{transform_indices = @transform_0, window_bounds = array<i64: 16, 128>}, {transform_indices = @transform_1, window_bounds = array<i64: 16, 128>}, {transform_indices = @transform_2, window_bounds = array<i64: 1, 1>}]} {
    %c0_i32 = arith.constant 0 : i32
    %0 = arith.cmpi eq, %arg1, %c0_i32 : i32
    %1 = arith.extui %0 : i1 to i32
    %c0_i32_0 = arith.constant 0 : i32
    %2 = arith.cmpi ne, %1, %c0_i32_0 : i32
    scf.if %2 {
      %cst_10 = arith.constant 0.000000e+00 : f32
      %15 = vector.broadcast %cst_10 : f32 to vector<16x128xf32>
      %c0_11 = arith.constant 0 : index
      %c0_12 = arith.constant 0 : index
      %16 = vector.load %arg5[%c0_11, %c0_12] : memref<16x128xf32, #tpu.memory_space<vmem>>, vector<16x128xf32>
      tpu.vector_store %arg5[%c0_11, %c0_12], %15 {strides = array<i32>} : memref<16x128xf32, #tpu.memory_space<vmem>>, vector<16x128xf32>,
    } else {
    }
    %cst = arith.constant 0.000000e+00 : f32
    %3 = vector.broadcast %cst : f32 to vector<16x128xf32>
    %c0 = arith.constant 0 : index
    %c0_1 = arith.constant 0 : index
    %4 = vector.load %arg2[%c0, %c0_1] : memref<16x128xf32, #tpu.memory_space<vmem>>, vector<16x128xf32>
    %c0_2 = arith.constant 0 : index
    %c0_3 = arith.constant 0 : index
    %5 = vector.load %arg3[%c0_2, %c0_3] : memref<16x128xf32, #tpu.memory_space<vmem>>, vector<16x128xf32>
    %6 = arith.subf %4, %5 : vector<16x128xf32>
    %7 = arith.mulf %6, %6 : vector<16x128xf32>
    %8 = arith.addf %3, %7 : vector<16x128xf32>
    %c0_4 = arith.constant 0 : index
    %c0_5 = arith.constant 0 : index
    %9 = vector.load %arg5[%c0_4, %c0_5] : memref<16x128xf32, #tpu.memory_space<vmem>>, vector<16x128xf32>
    %10 = arith.addf %9, %8 : vector<16x128xf32>
    %c0_6 = arith.constant 0 : index
    %c0_7 = arith.constant 0 : index
    %11 = vector.load %arg5[%c0_6, %c0_7] : memref<16x128xf32, #tpu.memory_space<vmem>>, vector<16x128xf32>
    tpu.vector_store %arg5[%c0_6, %c0_7], %10 {strides = array<i32>} : memref<16x128xf32, #tpu.memory_space<vmem>>, vector<16x128xf32>,
    %c0_i32_8 = arith.constant 0 : i32
    %12 = arith.cmpi eq, %arg1, %c0_i32_8 : i32
    %13 = arith.extui %12 : i1 to i32
    %c0_i32_9 = arith.constant 0 : i32
    %14 = arith.cmpi ne, %13, %c0_i32_9 : i32
    scf.if %14 {
      %c0_10 = arith.constant 0 : index
      %c0_11 = arith.constant 0 : index
      %15 = vector.load %arg5[%c0_10, %c0_11] : memref<16x128xf32, #tpu.memory_space<vmem>>, vector<16x128xf32>
      %16 = vector.shape_cast %15 : vector<16x128xf32> to vector<1x16x128xf32>
      %cst_12 = arith.constant dense<0.000000e+00> : vector<1xf32>
      %17 = vector.multi_reduction <add>, %16, %cst_12 [1, 2] : vector<1x16x128xf32> to vector<1xf32>
      %18 = vector.shape_cast %17 : vector<1xf32> to vector<1x1x1xf32>
      %19 = vector.extract %18[0, 0, 0] : f32 from vector<1x1x1xf32>
      %c0_13 = arith.constant 0 : index
      %c0_14 = arith.constant 0 : index
      %20 = memref.load %arg4[%c0_13, %c0_14] : memref<1x1xf32, #tpu.memory_space<smem>>
      memref.store %19, %arg4[%c0_13, %c0_14] : memref<1x1xf32, #tpu.memory_space<smem>>
    } else {
    }
    return
  }
  func.func @transform_0(%arg0: i32, %arg1: i32) -> (i32, i32) {
    %c1_i32 = arith.constant 1 : i32
    %0 = arith.muli %arg0, %c1_i32 : i32
    %1 = arith.addi %0, %arg1 : i32
    %c0_i32 = arith.constant 0 : i32
    %c0_i32_0 = arith.constant 0 : i32
    return %1, %c0_i32 : i32, i32
  }
  func.func @transform_1(%arg0: i32, %arg1: i32) -> (i32, i32) {
    %c1_i32 = arith.constant 1 : i32
    %0 = arith.muli %arg0, %c1_i32 : i32
    %1 = arith.addi %0, %arg1 : i32
    %c0_i32 = arith.constant 0 : i32
    %c0_i32_0 = arith.constant 0 : i32
    return %1, %c0_i32 : i32, i32
  }
  func.func @transform_2(%arg0: i32, %arg1: i32) -> (i32, i32) {
    %c0_i32 = arith.constant 0 : i32
    %c0_i32_0 = arith.constant 0 : i32
    return %arg0, %c0_i32 : i32, i32
  }
}

</mosaic_0001>

<bundles_post_ra>
// kernel: tpu_custom_call.1
= control target key start
LH: loop header
LB: loop body
LE: loop exit
PB: predicated region body
PF: predicated region fallthrough
CT: control target
= control target key end

     0   :  { %7 = vsyncpa [#allocation4], 0  ;;  %s229_s0 = inlined_call_operand.hbm [shape: f32[16,128], index: 0, kind: input, shape index: {}]   ;;  %s230_s1 = inlined_call_operand.hbm [shape: f32[16,128], index: 1, kind: input, shape index: {}]   ;;  %s231_s2 = inlined_call_operand.hbm [shape: f32[1,1], index: 2, kind: output, shape index: {}]  }
   0x1   :  { %8 = vsyncpa [#allocation7], 0 }
   0x2   :  { %9 = vsyncpa [#allocation5], 0  ;;  %s173_s9 = smov [#allocation3]   ;;  %s113_s13 = scalar_lea.hbm %s229_s0, 256 }
   0x3   :  { %s19_s10 = sshll.u32 %s173_s9, 4  ;;  %p114_p0 = scmp.ne.s32.totalorder %s229_s0, %s113_s13  ;;  %s20_s10 = int_to_ptr.vmem [resolvable:$true] %s19_s10 }
   0x4   :  { %p117_p1 = scmp.lt.u32.totalorder %s113_s13, %s229_s0 }
   0x6   :  { %p119_p2 = pnand %p117_p1, %p114_p0 }
   0x8   :  { %122 = shalt.err (!%p119_p2)
}
   0x9   :  { %s123_s18 = scalar_lea.vmem %s20_s10, 256  ;;  %p128_p4 = scmp.lt.s32.totalorder %s20_s10, %s20_s10 }
   0xa   :  { %p124_p3 = scmp.ne.s32.totalorder %s20_s10, %s123_s18  ;;  %p129_p5 = scmp.lt.s32.totalorder %s123_s18, %s123_s18 }
   0xc   :  { %p130_p6 = por %p129_p5, %p128_p4 }
   0xe   :  { %p131_p7 = pnand %p130_p6, %p124_p3 }
  0x10   :  { %134 = shalt.err (!%p131_p7)
}
  0x11   :  { %s174_s19 = smov 128   ;;  %s175_s20 = smov 8  }
  0x12   :  { %25 = dma.hbm_to_vmem [thread:$0]  %s229_s0, 256, %s20_s10, [#allocation4], %s174_s19, %s174_s19, %s175_s20  }
  0x13   :  { %s176_s23 = smov [#allocation6]   ;;  %s135_s27 = scalar_lea.hbm %s230_s1, 256 }
  0x14   :  { %s35_s24 = sshll.u32 %s176_s23, 4  ;;  %p136_p8 = scmp.ne.s32.totalorder %s230_s1, %s135_s27  ;;  %s36_s24 = int_to_ptr.vmem [resolvable:$true] %s35_s24 }
  0x15   :  { %p139_p9 = scmp.lt.u32.totalorder %s135_s27, %s230_s1 }
  0x17   :  { %p141_p10 = pnand %p139_p9, %p136_p8 }
  0x19   :  { %144 = shalt.err (!%p141_p10)
}
  0x1a   :  { %s145_s4 = scalar_lea.vmem %s36_s24, 256  ;;  %p150_p12 = scmp.lt.s32.totalorder %s36_s24, %s36_s24 }
  0x1b   :  { %p146_p11 = scmp.ne.s32.totalorder %s36_s24, %s145_s4  ;;  %p151_p13 = scmp.lt.s32.totalorder %s145_s4, %s145_s4 }
  0x1d   :  { %p152_p0 = por %p151_p13, %p150_p12 }
  0x1f   :  { %p153_p1 = pnand %p152_p0, %p146_p11 }
  0x21   :  { %156 = shalt.err (!%p153_p1)
}
  0x22   :  { %41 = dma.hbm_to_vmem [thread:$0]  %s230_s1, 256, %s36_s24, [#allocation7], %s174_s19, %s174_s19, %s175_s20  }
  0x23   :  { %167 = dma.done.wait [#allocation4], 256  }
  0x24   :  { %168 = vsyncadd [#allocation4], 4294967040 }
  0x25   :  { %169 = dma.done.wait [#allocation7], 256  }
  0x26   :  { %170 = vsyncadd [#allocation7], 4294967040  ;;  %v58_v0 = vld [vmem:[#allocation3] sm:$0xff]  ;;  %v59_v1 = vld [vmem:[#allocation3 + $0x8] sm:$0xff]  ;;  %s157_s8 = scalar_lea.hbm %s231_s2, 16 }
  0x27   :  { %v60_v2 = vld [vmem:[#allocation6] sm:$0xff]  ;;  %v61_v3 = vld [vmem:[#allocation6 + $0x8] sm:$0xff]  ;;  %p158_p2 = scmp.ne.s32.totalorder %s231_s2, %s157_s8  ;;  %p161_p3 = scmp.lt.u32.totalorder %s157_s8, %s231_s2 }
  0x28   :  { %v62_v4 = vsub.f32 %v58_v0, %v60_v2  ;;  %v63_v5 = vsub.f32 %v59_v1, %v61_v3 }
  0x29   :  { %p163_p4 = pnand %p161_p3, %p158_p2 }
  0x2a   :  { %v64_v6 = vmul.f32 %v62_v4, %v62_v4  ;;  %v65_v7 = vmul.f32 %v63_v5, %v63_v5 }
  0x2c   :  { %v79_v8 = vadd.f32 %v65_v7, %v64_v6 }
  0x2e   :  { %80 = vadd.xlane.f32.xlu0 %v79_v8 }
  0xbb   :  { %v81_v9 = vpop.xlane.xlu0 %80 }
  0xbc   :  { %v82_v10 = vrot.slane %v81_v9, 4 }
  0xbe   :  { %v83_v11 = vadd.f32 %v82_v10, %v81_v9 }
  0xc0   :  { %v84_v12 = vrot.slane %v83_v11, 2 }
  0xc2   :  { %v85_v13 = vadd.f32 %v84_v12, %v83_v11 }
  0xc4   :  { %v86_v14 = vrot.slane %v85_v13, 1 }
  0xc6   :  { %v87_v15 = vadd.f32 %v86_v14, %v85_v13 }
  0xc8   :  { %106 = vpush %v87_v15 }
  0xf9   :  { %s107_s1 = spop %106 }
  0xfa   :  { %90 = sst [smem:[#allocation8]] %s107_s1 }
  0xfb   :  { %166 = shalt.err (!%p163_p4)
}
  0xfc   :  { %s177_s13 = smov [#allocation8]  }
  0xfd   :  { %98 = dma.smem_to_hbm %s177_s13, 16, %s231_s2, [#allocation5]  }
  0xfe   :  { %171 = dma.done.wait [#allocation5], 16  }
  0xff   :  { %172 = vsyncadd [#allocation5], 4294967280 }
 0x100   :  { %102 = sfence }
 0x101   :  { %103 = vsyncpa [#allocation4], 1 }
 0x102   :  { %104 = vsyncpa [#allocation7], 1 }
 0x103   :  { %105 = vsyncpa [#allocation5], 1 }

</bundles_post_ra>
